<compile_context>
chip_gen: v7x
topology: tpu7x:2x2x1
jax: 0.10.0
libtpu: 0.0.40
codegen_flags: <defaults>
</compile_context>

<pallas_src>
import jax
import jax.numpy as jnp
import numpy as np
from jax.experimental import pallas as pl
from jax.experimental.pallas import tpu as pltpu

_LANES = 128


def _rosenbrock_kernel(params_ref, xt_ref, out_ref):
    # params_ref: (1, 2)              f32 SMEM  -> [alpha, beta]
    # xt_ref:     (2, TILE_ROWS, 128) f32 VMEM  -> [0] = x0 plane, [1] = x1 plane
    # out_ref:    (TILE_ROWS, 128)    f32 VMEM
    alpha = params_ref[0, 0]
    beta = params_ref[0, 1]
    x0 = xt_ref[0]                      # (TILE_ROWS, 128) full vreg tiles
    x1 = xt_ref[1]
    d0 = x0 - 1.0
    d1 = x0 - x1 * x1
    out_ref[...] = -(alpha * (d0 * d0)) - beta * (d1 * d1)


def dim2_rosenbrock_forward(x, alpha, beta, *, max_tile_rows=512):
    """Pallas implementation of dim2Rosenbrock.forward.

    x: array with last dim >= 2, of shape (2,), (N, 2) or (B, N, 2) (extra trailing
       features beyond the first two are ignored, matching the PyTorch indexing).
    Returns shape () / (N,) / (B, N) respectively, float32.
    """
    x = jnp.asarray(x, jnp.float32)
    orig_ndim = x.ndim
    if orig_ndim == 1:
        x = x[None, :]                                   # (1, 2)
    lead_shape = x.shape[:-1]
    n = int(np.prod(lead_shape)) if lead_shape else 1
    x2 = x.reshape(n, x.shape[-1])[:, :2]                # (n, 2)

    # --- lane-dense tiling: n points -> (rows, 128) with rows a multiple of 8 ---
    rows_needed = max(1, -(-n // _LANES))                # ceil(n / 128)
    tile_rows = min(max_tile_rows, -(-rows_needed // 8) * 8)   # multiple of 8
    n_rows = -(-rows_needed // tile_rows) * tile_rows          # multiple of tile_rows
    n_pad = n_rows * _LANES
    grid = n_rows // tile_rows

    # x transposed to (2, n_pad), zero padded tail, reshaped to dense vreg tiles.
    xt = jnp.pad(x2.T, ((0, 0), (0, n_pad - n))).reshape(2, n_rows, _LANES)
    params = jnp.array([[alpha, beta]], jnp.float32)

    out = pl.pallas_call(
        _rosenbrock_kernel,
        out_shape=jax.ShapeDtypeStruct((n_rows, _LANES), jnp.float32),
        grid=(grid,),
        in_specs=[
            pl.BlockSpec(memory_space=pltpu.SMEM),                    # alpha, beta
            pl.BlockSpec((2, tile_rows, _LANES), lambda i: (0, i, 0)),
        ],
        out_specs=pl.BlockSpec((tile_rows, _LANES), lambda i: (i, 0)),
        compiler_params=pltpu.CompilerParams(
            dimension_semantics=("parallel",)),
    )(params, xt)

    result = out.reshape(n_pad)[:n].reshape(lead_shape)
    if orig_ndim == 1:
        result = result.reshape(())                      # matches .squeeze(0)
    return result


def dim2_rosenbrock_normalization(alpha, beta):
    # Trivial scalar glue from the module (no kernel needed).
    return jnp.sqrt(jnp.asarray(alpha, jnp.float32) * jnp.asarray(beta, jnp.float32)) / np.pi


def _reference(x, alpha, beta):
    x = jnp.asarray(x, jnp.float32)
    if x.ndim == 1:
        x0, x1 = x[0], x[1]
    else:
        x0, x1 = x[..., 0], x[..., 1]
    return -alpha * (x0 - 1.0) ** 2 - beta * (x0 - x1 ** 2) ** 2


if __name__ == "__main__":
    key = jax.random.PRNGKey(0)
    alpha, beta = 1.0, 100.0

    k1, k2, k3 = jax.random.split(key, 3)
    x_2d = jax.random.normal(k1, (300, 2), dtype=jnp.float32)     # non-multiple of 128
    x_3d = jax.random.normal(k2, (2, 8, 2), dtype=jnp.float32)    # batched path
    x_1d = jax.random.normal(k3, (2,), dtype=jnp.float32)         # single-point path

    out_2d = jax.block_until_ready(dim2_rosenbrock_forward(x_2d, alpha, beta))
    out_3d = jax.block_until_ready(dim2_rosenbrock_forward(x_3d, alpha, beta))
    out_1d = jax.block_until_ready(dim2_rosenbrock_forward(x_1d, alpha, beta))

    np.testing.assert_allclose(np.asarray(out_2d), np.asarray(_reference(x_2d, alpha, beta)),
                               rtol=1e-5, atol=1e-5)
    np.testing.assert_allclose(np.asarray(out_3d), np.asarray(_reference(x_3d, alpha, beta)),
                               rtol=1e-5, atol=1e-5)
    np.testing.assert_allclose(np.asarray(out_1d), np.asarray(_reference(x_1d, alpha, beta)),
                               rtol=1e-5, atol=1e-5)

    assert out_2d.shape == (300,)
    assert out_3d.shape == (2, 8)
    assert out_1d.shape == ()

    print("KERNEL_OK")
</pallas_src>

<mosaic_0001>
module attributes {stable_mosaic.version = 11 : i64} {
  func.func @_rosenbrock_kernel(%arg0: i32, %arg1: memref<1x2xf32, #tpu.memory_space<smem>>, %arg2: memref<2x8x128xf32, #tpu.memory_space<vmem>>, %arg3: memref<8x128xf32, #tpu.memory_space<vmem>>) attributes {dimension_semantics = [#tpu.dimension_semantics<parallel>], iteration_bounds = array<i64: 1>, scalar_prefetch = 0 : i64, scratch_operands = 0 : i64, tpu.core_type = #tpu.core_type<tc>, window_params = [{transform_indices = @transform_0, window_bounds = array<i64: 1, 2>}, {transform_indices = @transform_1, window_bounds = array<i64: 2, 8, 128>}, {transform_indices = @transform_2, window_bounds = array<i64: 8, 128>}]} {
    %c0 = arith.constant 0 : index
    %c0_0 = arith.constant 0 : index
    %0 = memref.load %arg1[%c0, %c0_0] : memref<1x2xf32, #tpu.memory_space<smem>>
    %c0_1 = arith.constant 0 : index
    %c1 = arith.constant 1 : index
    %1 = memref.load %arg1[%c0_1, %c1] : memref<1x2xf32, #tpu.memory_space<smem>>
    %c0_2 = arith.constant 0 : index
    %c0_3 = arith.constant 0 : index
    %c0_4 = arith.constant 0 : index
    %2 = vector.load %arg2[%c0_2, %c0_3, %c0_4] : memref<2x8x128xf32, #tpu.memory_space<vmem>>, vector<1x8x128xf32>
    %3 = vector.shape_cast %2 : vector<1x8x128xf32> to vector<8x128xf32>
    %c1_5 = arith.constant 1 : index
    %c0_6 = arith.constant 0 : index
    %c0_7 = arith.constant 0 : index
    %4 = vector.load %arg2[%c1_5, %c0_6, %c0_7] : memref<2x8x128xf32, #tpu.memory_space<vmem>>, vector<1x8x128xf32>
    %5 = vector.shape_cast %4 : vector<1x8x128xf32> to vector<8x128xf32>
    %cst = arith.constant 1.000000e+00 : f32
    %6 = vector.broadcast %cst : f32 to vector<8x128xf32>
    %7 = arith.subf %3, %6 : vector<8x128xf32>
    %8 = arith.mulf %5, %5 : vector<8x128xf32>
    %9 = arith.subf %3, %8 : vector<8x128xf32>
    %10 = arith.mulf %7, %7 : vector<8x128xf32>
    %11 = vector.broadcast %0 : f32 to vector<8x128xf32>
    %12 = arith.mulf %11, %10 : vector<8x128xf32>
    %cst_8 = arith.constant 0.000000e+00 : f32
    %13 = vector.broadcast %cst_8 : f32 to vector<8x128xf32>
    %14 = arith.subf %13, %12 : vector<8x128xf32>
    %15 = arith.mulf %9, %9 : vector<8x128xf32>
    %16 = vector.broadcast %1 : f32 to vector<8x128xf32>
    %17 = arith.mulf %16, %15 : vector<8x128xf32>
    %18 = arith.subf %14, %17 : vector<8x128xf32>
    %c0_9 = arith.constant 0 : index
    %c0_10 = arith.constant 0 : index
    %19 = vector.load %arg3[%c0_9, %c0_10] : memref<8x128xf32, #tpu.memory_space<vmem>>, vector<8x128xf32>
    tpu.vector_store %arg3[%c0_9, %c0_10], %18 {strides = array<i32>} : memref<8x128xf32, #tpu.memory_space<vmem>>, vector<8x128xf32>,
    return
  }
  func.func @transform_0(%arg0: i32) -> (i32, i32) {
    %c0_i32 = arith.constant 0 : i32
    %c0_i32_0 = arith.constant 0 : i32
    %c0_i32_1 = arith.constant 0 : i32
    return %c0_i32, %c0_i32_0 : i32, i32
  }
  func.func @transform_1(%arg0: i32) -> (i32, i32, i32) {
    %c0_i32 = arith.constant 0 : i32
    %c0_i32_0 = arith.constant 0 : i32
    %c0_i32_1 = arith.constant 0 : i32
    return %c0_i32, %arg0, %c0_i32_0 : i32, i32, i32
  }
  func.func @transform_2(%arg0: i32) -> (i32, i32) {
    %c0_i32 = arith.constant 0 : i32
    %c0_i32_0 = arith.constant 0 : i32
    return %arg0, %c0_i32 : i32, i32
  }
}

</mosaic_0001>

<bundles_post_ra>
// kernel: tpu_custom_call.1
= control target key start
LH: loop header
LB: loop body
LE: loop exit
PB: predicated region body
PF: predicated region fallthrough
CT: control target
= control target key end

     0   :  { %7 = vsyncpa [#allocation5], 0  ;;  %s193_s0 = inlined_call_operand.hbm [shape: f32[1,2], index: 0, kind: input, shape index: {}]   ;;  %s194_s1 = inlined_call_operand.hbm [shape: f32[2,8,128], index: 1, kind: input, shape index: {}]   ;;  %s195_s2 = inlined_call_operand.hbm [shape: f32[8,128], index: 2, kind: output, shape index: {}]  }
   0x1   :  { %8 = vsyncpa [#allocation3], 0 }
   0x2   :  { %9 = vsyncpa [#allocation4], 0  ;;  %s77_s11 = scalar_lea.hbm %s193_s0, 16 }
   0x3   :  { %p78_p0 = scmp.ne.s32.totalorder %s193_s0, %s77_s11  ;;  %p81_p1 = scmp.lt.u32.totalorder %s77_s11, %s193_s0 }
   0x5   :  { %p83_p2 = pnand %p81_p1, %p78_p0 }
   0x7   :  { %86 = shalt.err (!%p83_p2)
}
   0x8   :  { %s137_s16 = smov [#allocation2]   ;;  %s138_s19 = smov [#allocation6]  }
   0x9   :  { %17 = dma.hbm_to_smem %s193_s0, 16, %s137_s16, [#allocation5]  }
   0xa   :  { %s23_s20 = sshll.u32 %s138_s19, 4  ;;  %s87_s23 = scalar_lea.hbm %s194_s1, 256  ;;  %s24_s20 = int_to_ptr.vmem [resolvable:$true] %s23_s20 }
   0xb   :  { %p88_p3 = scmp.ne.s32.totalorder %s194_s1, %s87_s23  ;;  %p91_p4 = scmp.lt.u32.totalorder %s87_s23, %s194_s1 }
   0xd   :  { %p93_p5 = pnand %p91_p4, %p88_p3 }
   0xf   :  { %96 = shalt.err (!%p93_p5)
}
  0x10   :  { %s97_s28 = scalar_lea.vmem %s24_s20, 256  ;;  %p102_p7 = scmp.lt.s32.totalorder %s24_s20, %s24_s20 }
  0x11   :  { %p98_p6 = scmp.ne.s32.totalorder %s24_s20, %s97_s28  ;;  %p103_p8 = scmp.lt.s32.totalorder %s97_s28, %s97_s28 }
  0x13   :  { %p104_p9 = por %p103_p8, %p102_p7 }
  0x15   :  { %p105_p10 = pnand %p104_p9, %p98_p6 }
  0x17   :  { %108 = shalt.err (!%p105_p10)
}
  0x18   :  { %s139_s0 = smov 128   ;;  %s140_s29 = smov 8  }
  0x19   :  { %29 = dma.hbm_to_vmem [thread:$0]  %s194_s1, 256, %s24_s20, [#allocation3], %s139_s0, %s139_s0, %s140_s29  }
  0x1a   :  { %131 = dma.done.wait [#allocation5], 16  }
  0x1b   :  { %132 = vsyncadd [#allocation5], 4294967280 }
  0x1c   :  { %133 = dma.done.wait [#allocation3], 256  }
  0x1d   :  { %134 = vsyncadd [#allocation3], 4294967040 }
  0x1e   :  { %36 = sfence }
  0x1f   :  { %s37_s4 = sld [smem:[#allocation2]]  ;;  %s70_s5 = sld [smem:[#allocation2 + $0x1]]  ;;  %v39_v0 = vld [vmem:[#allocation6] sm:$0xff]  ;;  %v41_v1 = vld [vmem:[#allocation6 + $0x8] sm:$0xff] }
  0x20   :  { %v71_v2 = vadd.f32 -1.0, %v39_v0  ;;  %v43_v3 = vmul.f32 %v41_v1, %v41_v1  ;;  %s141_s6 = smov [#allocation7]  }
  0x21   :  { %s60_s1 = sshll.u32 %s141_s6, 4  ;;  %s61_s1 = int_to_ptr.vmem [resolvable:$true] %s60_s1 }
  0x22   :  { %v44_v4 = vsub.f32 %v39_v0, %v43_v3  ;;  %v45_v5 = vmul.f32 %v71_v2, %v71_v2  ;;  %s109_s7 = scalar_lea.vmem %s61_s1, 128  ;;  %p114_p12 = scmp.lt.s32.totalorder %s61_s1, %s61_s1 }
  0x23   :  { %p110_p11 = scmp.ne.s32.totalorder %s61_s1, %s109_s7  ;;  %p115_p13 = scmp.lt.s32.totalorder %s109_s7, %s109_s7 }
  0x24   :  { %v49_v6 = vmul.f32 %v44_v4, %v44_v4 }
  0x25   :  { %v46_v7 = vstv %s37_s4  ;;  %v50_v8 = vstv %s70_s5  ;;  %p116_p0 = por %p115_p13, %p114_p12 }
  0x26   :  { %v47_v9 = vmul.f32 %v46_v7, %v45_v5  ;;  %v51_v10 = vmul.f32 %v50_v8, %v49_v6 }
  0x27   :  { %p117_p1 = pnand %p116_p0, %p110_p11 }
  0x28   :  { %v48_v11 = vsub.f32 0.0, %v47_v9 }
  0x2a   :  { %v52_v12 = vsub.f32 %v48_v11, %v51_v10 }
  0x2c   :  { %53 = vst [vmem:[#allocation7] sm:$0xff] %v52_v12 }
  0x2d   :  { %120 = shalt.err (!%p117_p1)
}
  0x2e   :  { %s121_s10 = scalar_lea.hbm %s195_s2, 128 }
  0x2f   :  { %p122_p2 = scmp.ne.s32.totalorder %s195_s2, %s121_s10  ;;  %p125_p3 = scmp.lt.u32.totalorder %s121_s10, %s195_s2 }
  0x31   :  { %p127_p4 = pnand %p125_p3, %p122_p2 }
  0x33   :  { %130 = shalt.err (!%p127_p4)
}
  0x34   :  { %63 = dma.vmem_to_hbm [thread:$0]  %s61_s1, 128, %s195_s2, [#allocation4]  }
  0x35   :  { %135 = dma.done.wait [#allocation4], 128  }
  0x36   :  { %136 = vsyncadd [#allocation4], 4294967168 }
  0x37   :  { %67 = vsyncpa [#allocation3], 1 }
  0x38   :  { %68 = vsyncpa [#allocation4], 1 }
  0x39   :  { %69 = vsyncpa [#allocation5], 1 }

</bundles_post_ra>
